<compile_context>
chip_gen: v7x
topology: tpu7x:2x2x1
jax: 0.10.0
libtpu: 0.0.40
codegen_flags: <defaults>
</compile_context>

<pallas_src>
import functools

import jax
import jax.numpy as jnp
from jax.experimental import pallas as pl
from jax.experimental.pallas import tpu as pltpu


def _round_up(n, m):
    return ((n + m - 1) // m) * m


def encoder_kernel(x_ref, wconv_ref, bconv_ref, wemb_ref, bemb_ref,
                   gamma_ref, beta_ref, out_ref, acc_ref, *, inv_hw, inv_b):
    hw = pl.program_id(0)

    @pl.when(hw == 0)
    def _init():
        acc_ref[...] = jnp.zeros_like(acc_ref)

    b, thw, cin = x_ref.shape
    # --- backbone stand-in: 1x1 conv as ONE tall-skinny matmul (bf16 -> f32)
    x = x_ref[...].reshape(b * thw, cin)                       # (B*thw, Cin) bf16
    h = jnp.dot(x, wconv_ref[...], preferred_element_type=jnp.float32)
    h = jnp.maximum(h + bconv_ref[...], 0.0)                   # bias + ReLU in f32 (VPU)

    # --- global-average-pool accumulation: per-batch spatial SUM into scratch
    acc_ref[...] += h.reshape(b, thw, -1).sum(axis=1)          # (B, Cfeat_p) f32

    @pl.when(hw == pl.num_programs(0) - 1)
    def _finalize():
        feat = acc_ref[...] * inv_hw                           # mean pool (one scalar mul)

        # --- self.embed: Linear(Cfeat, E)  (bf16 MXU, f32 accumulate)
        emb = jnp.dot(feat.astype(wemb_ref.dtype), wemb_ref[...],
                      preferred_element_type=jnp.float32) + bemb_ref[...]

        # --- self.bn: BatchNorm1d training-mode forward
        #     biased batch variance, eps = 1e-5, affine gamma/beta (all f32)
        mean = jnp.sum(emb, axis=0, keepdims=True) * inv_b
        cen = emb - mean
        var = jnp.sum(cen * cen, axis=0, keepdims=True) * inv_b
        y = cen * jax.lax.rsqrt(var + 1e-5)
        out_ref[...] = y * gamma_ref[...] + beta_ref[...]


def encoder_cnn_forward(images_nchw, params, *, thw=None):
    """images_nchw: (B, C, H, W) float32 -> (B, embed_size) float32."""
    B, C, H, W = images_nchw.shape
    HW = H * W
    Cfeat = params['wconv'].shape[1]
    E = params['wemb'].shape[1]
    Cfeat_p = _round_up(Cfeat, 128)
    E_p = _round_up(E, 128)

    # Spatial tile: multiple of 8 that divides HW.  At real ResNet scales pick
    # the largest tile that keeps 2 * (B*thw*Cin*2B) + weights well under the
    # v7x 64 MiB VMEM budget; at toy shapes anything works.
    if thw is None:
        thw = 128 if HW % 128 == 0 else HW
    n_hw = HW // thw

    # Layout glue in plain JAX: NCHW -> (B, HW, C), bf16 for the MXU stream.
    # TODO(synk): feed NHWC straight from the data pipeline to eliminate this
    # full HBM round-trip at 224x224 resolution.
    x = jnp.transpose(images_nchw, (0, 2, 3, 1)).reshape(B, HW, C)
    x = x.astype(jnp.bfloat16)

    # Zero-pad feature / embed dims to 128 lanes (lane-dense MXU work and
    # unmasked vst stores); padded columns stay exactly zero end-to-end and
    # are sliced off the output.
    wconv = jnp.pad(params['wconv'],
                    ((0, 0), (0, Cfeat_p - Cfeat))).astype(jnp.bfloat16)
    bconv = jnp.pad(params['bconv'], ((0, 0), (0, Cfeat_p - Cfeat)))
    wemb = jnp.pad(params['wemb'],
                   ((0, Cfeat_p - Cfeat), (0, E_p - E))).astype(jnp.bfloat16)
    bemb = jnp.pad(params['bemb'], ((0, 0), (0, E_p - E)))
    gamma = jnp.pad(params['gamma'], ((0, 0), (0, E_p - E)), constant_values=1.0)
    beta = jnp.pad(params['beta'], ((0, 0), (0, E_p - E)))

    kernel = functools.partial(encoder_kernel,
                               inv_hw=float(1.0 / HW), inv_b=float(1.0 / B))

    out_p = pl.pallas_call(
        kernel,
        out_shape=jax.ShapeDtypeStruct((B, E_p), jnp.float32),
        grid_spec=pltpu.PrefetchScalarGridSpec(
            num_scalar_prefetch=0,
            grid=(n_hw,),
            in_specs=[
                # x is tiled over HW (double-buffered); params use a constant
                # block index so they are DMA'd once and stay VMEM-resident.
                pl.BlockSpec((B, thw, C), lambda h: (0, h, 0)),
                pl.BlockSpec((C, Cfeat_p), lambda h: (0, 0)),
                pl.BlockSpec((1, Cfeat_p), lambda h: (0, 0)),
                pl.BlockSpec((Cfeat_p, E_p), lambda h: (0, 0)),
                pl.BlockSpec((1, E_p), lambda h: (0, 0)),
                pl.BlockSpec((1, E_p), lambda h: (0, 0)),
                pl.BlockSpec((1, E_p), lambda h: (0, 0)),
            ],
            out_specs=pl.BlockSpec((B, E_p), lambda h: (0, 0)),
            scratch_shapes=[pltpu.VMEM((B, Cfeat_p), jnp.float32)],
        ),
        compiler_params=pltpu.CompilerParams(
            # HW is a reduction into the shared accumulator -> "arbitrary".
            # (BN over the batch forbids splitting B across cores here.)
            dimension_semantics=("arbitrary",),
            vmem_limit_bytes=32 * 1024 * 1024,
        ),
    )(x, wconv, bconv, wemb, bemb, gamma, beta)

    return out_p[:, :E]


def reference_forward(images_nchw, params):
    """Pure-JAX reference with the same bf16-MXU / f32-accumulate recipe."""
    B, C, H, W = images_nchw.shape
    x = jnp.transpose(images_nchw, (0, 2, 3, 1)).reshape(B, H * W, C)
    xb = x.astype(jnp.bfloat16)
    wc = params['wconv'].astype(jnp.bfloat16)
    h = jnp.einsum('bhc,cf->bhf', xb, wc, preferred_element_type=jnp.float32)
    h = jnp.maximum(h + params['bconv'], 0.0)
    feat = jnp.mean(h, axis=1)
    emb = jnp.dot(feat.astype(jnp.bfloat16),
                  params['wemb'].astype(jnp.bfloat16),
                  preferred_element_type=jnp.float32) + params['bemb']
    mean = jnp.mean(emb, axis=0, keepdims=True)
    var = jnp.mean((emb - mean) ** 2, axis=0, keepdims=True)
    y = (emb - mean) / jnp.sqrt(var + 1e-5)
    return y * params['gamma'] + params['beta']


def init_params(key, cin, cfeat, embed_size):
    k1, k2, k3, k4 = jax.random.split(key, 4)
    return {
        # stand-in backbone (frozen ResNet-50 surrogate): 1x1 conv weights
        'wconv': 0.1 * jax.random.normal(k1, (cin, cfeat), jnp.float32),
        'bconv': 0.1 * jax.random.normal(k2, (1, cfeat), jnp.float32),
        # self.embed = nn.Linear(resnet.fc.in_features, embed_size)
        'wemb': 0.1 * jax.random.normal(k3, (cfeat, embed_size), jnp.float32),
        'bemb': 0.1 * jax.random.normal(k4, (1, embed_size), jnp.float32),
        # self.bn = nn.BatchNorm1d(embed_size) affine params (PyTorch init)
        'gamma': jnp.ones((1, embed_size), jnp.float32),
        'beta': jnp.zeros((1, embed_size), jnp.float32),
    }


if __name__ == "__main__":
    key = jax.random.PRNGKey(0)
    k_img, k_par = jax.random.split(key)

    B, C, H, W = 2, 4, 16, 16          # small synthetic "images"
    CFEAT = 32                          # stand-in for resnet.fc.in_features (=2048)
    EMBED = 32                          # embed_size

    images = jax.random.normal(k_img, (B, C, H, W), jnp.float32)
    params = init_params(k_par, C, CFEAT, EMBED)

    out = jax.block_until_ready(encoder_cnn_forward(images, params))
    ref = reference_forward(images, params)

    assert out.shape == (B, EMBED)
    assert jnp.allclose(out, ref, atol=1e-2, rtol=1e-2), "mismatch vs JAX ref"

    print("KERNEL_OK")
</pallas_src>

<mosaic_0001>
module attributes {stable_mosaic.version = 11 : i64} {
  func.func @encoder_kernel(%arg0: i32, %arg1: memref<2x128x4xbf16, #tpu.memory_space<vmem>>, %arg2: memref<4x128xbf16, #tpu.memory_space<vmem>>, %arg3: memref<1x128xf32, #tpu.memory_space<vmem>>, %arg4: memref<128x128xbf16, #tpu.memory_space<vmem>>, %arg5: memref<1x128xf32, #tpu.memory_space<vmem>>, %arg6: memref<1x128xf32, #tpu.memory_space<vmem>>, %arg7: memref<1x128xf32, #tpu.memory_space<vmem>>, %arg8: memref<2x128xf32, #tpu.memory_space<vmem>>, %arg9: memref<2x128xf32, #tpu.memory_space<vmem>>) attributes {dimension_semantics = [#tpu.dimension_semantics<arbitrary>], iteration_bounds = array<i64: 2>, scalar_prefetch = 0 : i64, scratch_operands = 1 : i64, tpu.core_type = #tpu.core_type<tc>, window_params = [{transform_indices = @transform_0, window_bounds = array<i64: 2, 128, 4>}, {pipeline_mode = #tpu.pipeline_mode<synchronous>, transform_indices = @transform_1, window_bounds = array<i64: 4, 128>}, {pipeline_mode = #tpu.pipeline_mode<synchronous>, transform_indices = @transform_2, window_bounds = array<i64: 1, 128>}, {pipeline_mode = #tpu.pipeline_mode<synchronous>, transform_indices = @transform_3, window_bounds = array<i64: 128, 128>}, {pipeline_mode = #tpu.pipeline_mode<synchronous>, transform_indices = @transform_4, window_bounds = array<i64: 1, 128>}, {pipeline_mode = #tpu.pipeline_mode<synchronous>, transform_indices = @transform_5, window_bounds = array<i64: 1, 128>}, {pipeline_mode = #tpu.pipeline_mode<synchronous>, transform_indices = @transform_6, window_bounds = array<i64: 1, 128>}, {pipeline_mode = #tpu.pipeline_mode<synchronous>, transform_indices = @transform_7, window_bounds = array<i64: 2, 128>}]} {
    %c0_i32 = arith.constant 0 : i32
    %0 = arith.cmpi eq, %arg0, %c0_i32 : i32
    %1 = arith.extui %0 : i1 to i32
    %c0_i32_0 = arith.constant 0 : i32
    %2 = arith.cmpi ne, %1, %c0_i32_0 : i32
    scf.if %2 {
      %cst_14 = arith.constant 0.000000e+00 : f32
      %20 = vector.broadcast %cst_14 : f32 to vector<2x128xf32>
      %c0_15 = arith.constant 0 : index
      %c0_16 = arith.constant 0 : index
      %21 = vector.load %arg9[%c0_15, %c0_16] : memref<2x128xf32, #tpu.memory_space<vmem>>, vector<2x128xf32>
      tpu.vector_store %arg9[%c0_15, %c0_16], %20 {strides = array<i32>} : memref<2x128xf32, #tpu.memory_space<vmem>>, vector<2x128xf32>,
    } else {
    }
    %c0 = arith.constant 0 : index
    %c0_1 = arith.constant 0 : index
    %c0_2 = arith.constant 0 : index
    %3 = vector.load %arg1[%c0, %c0_1, %c0_2] : memref<2x128x4xbf16, #tpu.memory_space<vmem>>, vector<2x128x4xbf16>
    %4 = vector.shape_cast %3 : vector<2x128x4xbf16> to vector<256x4xbf16>
    %c0_3 = arith.constant 0 : index
    %c0_4 = arith.constant 0 : index
    %5 = vector.load %arg2[%c0_3, %c0_4] : memref<4x128xbf16, #tpu.memory_space<vmem>>, vector<4x128xbf16>
    %cst = arith.constant dense<0.000000e+00> : vector<256x128xf32>
    %6 = tpu.matmul %4, %5, %cst {dimension_numbers = #tpu.dot_dimension_numbers<[1], [0], [0], [1], [0, 0, 1, 1], [], []>} : vector<256x4xbf16>, vector<4x128xbf16>, vector<256x128xf32> -> vector<256x128xf32>
    %c0_5 = arith.constant 0 : index
    %c0_6 = arith.constant 0 : index
    %7 = vector.load %arg3[%c0_5, %c0_6] : memref<1x128xf32, #tpu.memory_space<vmem>>, vector<1x128xf32>
    %8 = vector.broadcast %7 : vector<1x128xf32> to vector<256x128xf32>
    %9 = arith.addf %6, %8 : vector<256x128xf32>
    %cst_7 = arith.constant 0.000000e+00 : f32
    %10 = vector.broadcast %cst_7 : f32 to vector<256x128xf32>
    %11 = arith.maximumf %9, %10 : vector<256x128xf32>
    %c0_8 = arith.constant 0 : index
    %c0_9 = arith.constant 0 : index
    %12 = vector.load %arg9[%c0_8, %c0_9] : memref<2x128xf32, #tpu.memory_space<vmem>>, vector<2x128xf32>
    %13 = vector.shape_cast %11 : vector<256x128xf32> to vector<2x128x128xf32>
    %cst_10 = arith.constant dense<0.000000e+00> : vector<2x128xf32>
    %14 = vector.multi_reduction <add>, %13, %cst_10 [1] : vector<2x128x128xf32> to vector<2x128xf32>
    %15 = arith.addf %12, %14 : vector<2x128xf32>
    %c0_11 = arith.constant 0 : index
    %c0_12 = arith.constant 0 : index
    %16 = vector.load %arg9[%c0_11, %c0_12] : memref<2x128xf32, #tpu.memory_space<vmem>>, vector<2x128xf32>
    tpu.vector_store %arg9[%c0_11, %c0_12], %15 {strides = array<i32>} : memref<2x128xf32, #tpu.memory_space<vmem>>, vector<2x128xf32>,
    %c1_i32 = arith.constant 1 : i32
    %17 = arith.cmpi eq, %arg0, %c1_i32 : i32
    %18 = arith.extui %17 : i1 to i32
    %c0_i32_13 = arith.constant 0 : i32
    %19 = arith.cmpi ne, %18, %c0_i32_13 : i32
    scf.if %19 {
      %c0_14 = arith.constant 0 : index
      %c0_15 = arith.constant 0 : index
      %20 = vector.load %arg9[%c0_14, %c0_15] : memref<2x128xf32, #tpu.memory_space<vmem>>, vector<2x128xf32>
      %cst_16 = arith.constant 3.906250e-03 : f32
      %21 = vector.broadcast %cst_16 : f32 to vector<2x128xf32>
      %22 = arith.mulf %20, %21 : vector<2x128xf32>
      %23 = arith.truncf %22 : vector<2x128xf32> to vector<2x128xbf16>
      %c0_17 = arith.constant 0 : index
      %c0_18 = arith.constant 0 : index
      %24 = vector.load %arg4[%c0_17, %c0_18] : memref<128x128xbf16, #tpu.memory_space<vmem>>, vector<128x128xbf16>
      %cst_19 = arith.constant dense<0.000000e+00> : vector<2x128xf32>
      %25 = tpu.matmul %23, %24, %cst_19 {dimension_numbers = #tpu.dot_dimension_numbers<[1], [0], [0], [1], [0, 0, 1, 1], [], []>} : vector<2x128xbf16>, vector<128x128xbf16>, vector<2x128xf32> -> vector<2x128xf32>
      %c0_20 = arith.constant 0 : index
      %c0_21 = arith.constant 0 : index
      %26 = vector.load %arg5[%c0_20, %c0_21] : memref<1x128xf32, #tpu.memory_space<vmem>>, vector<1x128xf32>
      %27 = vector.broadcast %26 : vector<1x128xf32> to vector<2x128xf32>
      %28 = arith.addf %25, %27 : vector<2x128xf32>
      %cst_22 = arith.constant dense<0.000000e+00> : vector<128xf32>
      %29 = vector.multi_reduction <add>, %28, %cst_22 [0] : vector<2x128xf32> to vector<128xf32>
      %30 = vector.shape_cast %29 : vector<128xf32> to vector<1x128xf32>
      %cst_23 = arith.constant 5.000000e-01 : f32
      %31 = vector.broadcast %cst_23 : f32 to vector<1x128xf32>
      %32 = arith.mulf %30, %31 : vector<1x128xf32>
      %33 = vector.broadcast %32 : vector<1x128xf32> to vector<2x128xf32>
      %34 = arith.subf %28, %33 : vector<2x128xf32>
      %35 = arith.mulf %34, %34 : vector<2x128xf32>
      %cst_24 = arith.constant dense<0.000000e+00> : vector<128xf32>
      %36 = vector.multi_reduction <add>, %35, %cst_24 [0] : vector<2x128xf32> to vector<128xf32>
      %37 = vector.shape_cast %36 : vector<128xf32> to vector<1x128xf32>
      %cst_25 = arith.constant 5.000000e-01 : f32
      %38 = vector.broadcast %cst_25 : f32 to vector<1x128xf32>
      %39 = arith.mulf %37, %38 : vector<1x128xf32>
      %cst_26 = arith.constant 9.99999974E-6 : f32
      %40 = vector.broadcast %cst_26 : f32 to vector<1x128xf32>
      %41 = arith.addf %39, %40 : vector<1x128xf32>
      %42 = math.rsqrt %41 : vector<1x128xf32>
      %43 = vector.broadcast %42 : vector<1x128xf32> to vector<2x128xf32>
      %44 = arith.mulf %34, %43 : vector<2x128xf32>
      %c0_27 = arith.constant 0 : index
      %c0_28 = arith.constant 0 : index
      %45 = vector.load %arg6[%c0_27, %c0_28] : memref<1x128xf32, #tpu.memory_space<vmem>>, vector<1x128xf32>
      %46 = vector.broadcast %45 : vector<1x128xf32> to vector<2x128xf32>
      %47 = arith.mulf %44, %46 : vector<2x128xf32>
      %c0_29 = arith.constant 0 : index
      %c0_30 = arith.constant 0 : index
      %48 = vector.load %arg7[%c0_29, %c0_30] : memref<1x128xf32, #tpu.memory_space<vmem>>, vector<1x128xf32>
      %49 = vector.broadcast %48 : vector<1x128xf32> to vector<2x128xf32>
      %50 = arith.addf %47, %49 : vector<2x128xf32>
      %c0_31 = arith.constant 0 : index
      %c0_32 = arith.constant 0 : index
      %51 = vector.load %arg8[%c0_31, %c0_32] : memref<2x128xf32, #tpu.memory_space<vmem>>, vector<2x128xf32>
      tpu.vector_store %arg8[%c0_31, %c0_32], %50 {strides = array<i32>} : memref<2x128xf32, #tpu.memory_space<vmem>>, vector<2x128xf32>,
    } else {
    }
    return
  }
  func.func @transform_0(%arg0: i32) -> (i32, i32, i32) {
    %c0_i32 = arith.constant 0 : i32
    %c0_i32_0 = arith.constant 0 : i32
    %c0_i32_1 = arith.constant 0 : i32
    return %c0_i32, %arg0, %c0_i32_0 : i32, i32, i32
  }
  func.func @transform_1(%arg0: i32) -> (i32, i32) {
    %c0_i32 = arith.constant 0 : i32
    %c0_i32_0 = arith.constant 0 : i32
    %c0_i32_1 = arith.constant 0 : i32
    return %c0_i32, %c0_i32_0 : i32, i32
  }
  func.func @transform_2(%arg0: i32) -> (i32, i32) {
    %c0_i32 = arith.constant 0 : i32
    %c0_i32_0 = arith.constant 0 : i32
    %c0_i32_1 = arith.constant 0 : i32
    return %c0_i32, %c0_i32_0 : i32, i32
  }
  func.func @transform_3(%arg0: i32) -> (i32, i32) {
    %c0_i32 = arith.constant 0 : i32
    %c0_i32_0 = arith.constant 0 : i32
    %c0_i32_1 = arith.constant 0 : i32
    return %c0_i32, %c0_i32_0 : i32, i32
  }
  func.func @transform_4(%arg0: i32) -> (i32, i32) {
    %c0_i32 = arith.constant 0 : i32
    %c0_i32_0 = arith.constant 0 : i32
    %c0_i32_1 = arith.constant 0 : i32
    return %c0_i32, %c0_i32_0 : i32, i32
  }
  func.func @transform_5(%arg0: i32) -> (i32, i32) {
    %c0_i32 = arith.constant 0 : i32
    %c0_i32_0 = arith.constant 0 : i32
    %c0_i32_1 = arith.constant 0 : i32
    return %c0_i32, %c0_i32_0 : i32, i32
  }
  func.func @transform_6(%arg0: i32) -> (i32, i32) {
    %c0_i32 = arith.constant 0 : i32
    %c0_i32_0 = arith.constant 0 : i32
    %c0_i32_1 = arith.constant 0 : i32
    return %c0_i32, %c0_i32_0 : i32, i32
  }
  func.func @transform_7(%arg0: i32) -> (i32, i32) {
    %c0_i32 = arith.constant 0 : i32
    %c0_i32_0 = arith.constant 0 : i32
    %c0_i32_1 = arith.constant 0 : i32
    return %c0_i32, %c0_i32_0 : i32, i32
  }
}

</mosaic_0001>

<bundles_post_ra>
// kernel: tpu_custom_call.1
= control target key start
LH: loop header
LB: loop body
LE: loop exit
PB: predicated region body
PF: predicated region fallthrough
CT: control target
= control target key end

     0   :  { %12 = vsyncpa [#allocation5], 0  ;;  %s1363_s24 = smov 0   ;;  %s1365_s25 = smov 0   ;;  %s1567_s0 = inlined_call_operand.vmem [shape: bf16[2,256,4], index: 0, kind: input, shape index: {}]   ;;  %s1568_s1 = inlined_call_operand.vmem [shape: bf16[4,128], index: 1, kind: input, shape index: {}]   ;;  %s1569_s2 = inlined_call_operand.vmem [shape: f32[1,128], index: 2, kind: input, shape index: {}]   ;;  %s1570_s3 = inlined_call_operand.vmem [shape: bf16[128,128], index: 3, kind: input, shape index: {}]   ;;  %s1571_s4 = inlined_call_operand.vmem [shape: f32[1,128], index: 4, kind: input, shape index: {}]   ;;  %s1572_s5 = inlined_call_operand.vmem [shape: f32[1,128], index: 5, kind: input, shape index: {}]   ;;  %s1573_s6 = inlined_call_operand.vmem [shape: f32[1,128], index: 6, kind: input, shape index: {}]   ;;  %s1574_s7 = inlined_call_operand.hbm [shape: f32[2,128], index: 7, kind: output, shape index: {}]  }
   0x1   :  { %s1367_s26 = smov 0  }
   0x2 LB: > { %s1379_s27 = sadd.s32 4294967295, %s1317_s26   ;;  %s1382_s28 = sadd.s32 1, %s1317_s26   ;;  %s1317_s26 = sphi %s1367_s26, %s1577_s26   ;;  %s1313_s25 = sphi %s1365_s25, %s1576_s25   ;;  %s1309_s24 = sphi %s1363_s24, %s1575_s24  }
   0x3   : > { %s22_s29 = ssub.s32 %s1317_s26, %s1382_s28  ;;  %s25_s30 = sadd.s32 1, %s1313_s25 }
   0x4   : > { %p23_p0 = scmp.eq.s32.totalorder %s22_s29, 0  ;;  %p32_p1 = scmp.ne.s32.totalorder %s1313_s25, %s1309_s24 }
   0x5   : > { %p33_p2 = scmp.eq.s32.totalorder %s1317_s26, 0  ;;  %p1064_p4 = scmp.ge.s32.totalorder %s1317_s26, 2 }
   0x6   : > { %s1391_s8 = scalar_select %p23_p0, %s1313_s25, %s25_s30  }
   0x7   : > { %p34_p3 = por %p33_p2, %p32_p1  ;;  %223 = sbr.rel (%p1064_p4) target bundleno = 26 (0x1a), region = 40 }
   0xe   : > { %226 = sbr.rel (!%p34_p3) target bundleno = 26 (0x1a), region = 44  ;;  %s228_s9 = sand.u32 (%p34_p3), 1, %s1313_s25  }
   0xf   : > { %s1120_s10 = sshll.u32 (%p34_p3), %s1317_s26, 6  ;;  %s1065_s11 = sshll.u32 (%p34_p3), %s228_s9, 7 }
  0x10   : > { %s1399_s14 = scalar_lea.vmem (%p34_p3), %s1567_s0, %s1120_s10  ;;  %s230_s15 = scalar_lea.vmem (%p34_p3), [#allocation3], %s1065_s11 }
  0x11   : > { %v249_v0 = vld [vmem:[%s1399_s14] sm:$0xff] (%p34_p3)   ;;  %v253_v1 = vld [vmem:[%s1399_s14 + $0x8] sm:$0xff] (%p34_p3)   ;;  %v257_v2 = vld [vmem:[%s1399_s14 + $0x10] sm:$0xff] (%p34_p3)  }
  0x12   : > { %250 = vst [vmem:[%s230_s15] sm:$0xff] (%p34_p3), %v249_v0   ;;  %254 = vst [vmem:[%s230_s15 + $0x8] sm:$0xff] (%p34_p3), %v253_v1   ;;  %v261_v3 = vld [vmem:[%s1399_s14 + $0x18] sm:$0xff] (%p34_p3)   ;;  %v265_v4 = vld [vmem:[%s1399_s14 + $0x20] sm:$0xff] (%p34_p3)  }
  0x13   : > { %258 = vst [vmem:[%s230_s15 + $0x10] sm:$0xff] (%p34_p3), %v257_v2   ;;  %v269_v5 = vld [vmem:[%s1399_s14 + $0x28] sm:$0xff] (%p34_p3)   ;;  %262 = vst [vmem:[%s230_s15 + $0x18] sm:$0xff] (%p34_p3), %v261_v3   ;;  %v273_v6 = vld [vmem:[%s1399_s14 + $0x30] sm:$0xff] (%p34_p3)  }
  0x14   : > { %266 = vst [vmem:[%s230_s15 + $0x20] sm:$0xff] (%p34_p3), %v265_v4   ;;  %270 = vst [vmem:[%s230_s15 + $0x28] sm:$0xff] (%p34_p3), %v269_v5   ;;  %v277_v7 = vld [vmem:[%s1399_s14 + $0x38] sm:$0xff] (%p34_p3)   ;;  %v281_v8 = vld [vmem:[%s1399_s14 + $0x80] sm:$0xff] (%p34_p3)  }
  0x15   : > { %274 = vst [vmem:[%s230_s15 + $0x30] sm:$0xff] %v273_v6   ;;  %278 = vst [vmem:[%s230_s15 + $0x38] sm:$0xff] %v277_v7   ;;  %v285_v9 = vld [vmem:[%s1399_s14 + $0x88] sm:$0xff]   ;;  %v289_v10 = vld [vmem:[%s1399_s14 + $0x90] sm:$0xff]  }
  0x16   : > { %282 = vst [vmem:[%s230_s15 + $0x40] sm:$0xff] %v281_v8   ;;  %v293_v11 = vld [vmem:[%s1399_s14 + $0x98] sm:$0xff]   ;;  %286 = vst [vmem:[%s230_s15 + $0x48] sm:$0xff] %v285_v9   ;;  %v297_v12 = vld [vmem:[%s1399_s14 + $0xa0] sm:$0xff]  }
  0x17   : > { %290 = vst [vmem:[%s230_s15 + $0x50] sm:$0xff] %v289_v10   ;;  %294 = vst [vmem:[%s230_s15 + $0x58] sm:$0xff] %v293_v11   ;;  %v301_v13 = vld [vmem:[%s1399_s14 + $0xa8] sm:$0xff]   ;;  %v305_v14 = vld [vmem:[%s1399_s14 + $0xb0] sm:$0xff]  }
  0x18   : > { %298 = vst [vmem:[%s230_s15 + $0x60] sm:$0xff] %v297_v12   ;;  %302 = vst [vmem:[%s230_s15 + $0x68] sm:$0xff] %v301_v13   ;;  %v309_v15 = vld [vmem:[%s1399_s14 + $0xb8] sm:$0xff]  }
  0x19   : > { %306 = vst [vmem:[%s230_s15 + $0x70] sm:$0xff] %v305_v14   ;;  %310 = vst [vmem:[%s230_s15 + $0x78] sm:$0xff] %v309_v15  }
  0x1a PF: > { %p1068_p5 = scmp.ge.s32.totalorder %s1317_s26, 1  ;;  %p398_p6 = scmp.lt.s32.totalorder %s1317_s26, 3 }
  0x1c   : > { %p399_p7 = pnand %p1068_p5, %p398_p6 }
  0x1d   : > { %s405_s16 = sand.u32 (!%p399_p7), 1, %s1309_s24   ;;  %p1070_p8 = scmp.ne.s32.totalorder (!%p399_p7), %s1379_s27, 0 }
  0x1e   : > { %402 = sbr.rel (%p399_p7) target bundleno = 619 (0x26b), region = 85  ;;  %s1069_s17 = sshll.u32 (!%p399_p7), %s405_s16, 7 }
  0x1f   : > { %s1420_s18 = scalar_lea.vmem (!%p399_p7), [#allocation3], %s1069_s17 }
  0x25   : > { %436 = sbr.rel (%p1070_p8) target bundleno = 44 (0x2c), region = 93  ;;  %v1319_v16 = vmov (!%p1070_p8), 0.0  }
  0x26   : > { %437 = vst [vmem:[#allocation2] sm:$0x3] (!%p1070_p8), %v1319_v16 }
  0x2c PF: > { %v470_v17 = vld [vmem:[%s1568_s1] sm:$0x3]  ;;  %vm607_vm0 = vcmask 1041408   ;;  %v1239_v18 = vld [vmem:[%s1420_s18] sm:$0xff]   ;;  %vm558_vm1 = vcmask 31744   ;;  %v1241_v21 = vld [vmem:[%s1420_s18 + $0x8] sm:$0xff]  }
  0x2d   : > { %1203 = vmatprep.subr.msk.bf16.mxu0 %vm607_vm0, %v470_v17  ;;  %1204 = vmatprep.subr.msk.bf16.mxu1 %vm607_vm0, %v470_v17  ;;  %v609_v19 = vsel %vm607_vm0, %v470_v17, 0  ;;  %v1240_v20 = vld [vmem:[%s1420_s18 + $0x40] sm:$0xff]   ;;  %v1242_v22 = vld [vmem:[%s1420_s18 + $0x48] sm:$0xff]   ;;  %v1243_v23 = vld [vmem:[%s1420_s18 + $0x10] sm:$0xff]   ;;  %vm849_vm2 = vcmask 1041409   ;;  %p1104_p9 = scmp.ne.s32.totalorder %s1379_s27, 1 }
  0x2e   : > { %1148 = vmatpush3.bf16.msra.mxu0 %v609_v19  ;;  %1202 = vmatpush3.bf16.msra.mxu1 %v609_v19  ;;  %v1244_v24 = vld [vmem:[%s1420_s18 + $0x50] sm:$0xff]   ;;  %v1245_v25 = vld [vmem:[%s1420_s18 + $0x18] sm:$0xff]   ;;  %v1247_v27 = vld [vmem:[%s1420_s18 + $0x20] sm:$0xff]   ;;  %vm1321_vm3 = vmmov (!%p1104_p9), 0  }
  0x2f   : > { %1149 = vmatprep.mubr.msk.bf16.mxu0 %vm558_vm1, %v1239_v18  ;;  %1165 = vmatprep.mubr.msk.bf16.mxu1 %vm558_vm1, %v1240_v20  ;;  %v1246_v26 = vld [vmem:[%s1420_s18 + $0x58] sm:$0xff]   ;;  %v1248_v28 = vld [vmem:[%s1420_s18 + $0x60] sm:$0xff]   ;;  %v1249_v29 = vld [vmem:[%s1420_s18 + $0x28] sm:$0xff]  }
  0x30   : > { %v1250_v30 = vld [vmem:[%s1420_s18 + $0x68] sm:$0xff]   ;;  %v1251_v31 = vld [vmem:[%s1420_s18 + $0x30] sm:$0xff]   ;;  %v1253_v33 = vld [vmem:[%s1420_s18 + $0x38] sm:$0xff]  }
  0x31   : > { %1150 = vmatmul.mubr.msk.bf16.vlgmr.msra.gmra.mrb[0].mxu0 %vm558_vm1, %v1241_v21  ;;  %1166 = vmatmul.mubr.msk.bf16.vlgmr.msra.gmra.mrb[0].mxu1 %vm558_vm1, %v1242_v22  ;;  %v1252_v32 = vld [vmem:[%s1420_s18 + $0x70] sm:$0xff]   ;;  %v1254_v34 = vld [vmem:[%s1420_s18 + $0x78] sm:$0xff]  }
  0x32   : > { %1153 = vmatprep.mubr.msk.bf16.mxu0 %vm558_vm1, %v1243_v23  ;;  %1169 = vmatprep.mubr.msk.bf16.mxu1 %vm558_vm1, %v1244_v24  ;;  %v1464_v35 = vld [vmem:[%s1569_s2] ss:$0 sm:$0xff] }
  0x39   : > { %1154 = vmatmul.mubr.msk.bf16.gmra.mrb[4].mxu0 %vm558_vm1, %v1245_v25  ;;  %1170 = vmatmul.mubr.msk.bf16.gmra.mrb[4].mxu1 %vm558_vm1, %v1246_v26 }
  0x3a   : > { %1157 = vmatprep.mubr.msk.bf16.mxu0 %vm558_vm1, %v1247_v27  ;;  %1173 = vmatprep.mubr.msk.bf16.mxu1 %vm558_vm1, %v1248_v28 }
  0x41   : > { %1158 = vmatmul.mubr.msk.bf16.gmra.mrb[8].mxu0 %vm558_vm1, %v1249_v29  ;;  %1174 = vmatmul.mubr.msk.bf16.gmra.mrb[8].mxu1 %vm558_vm1, %v1250_v30 }
  0x42   : > { %1161 = vmatprep.mubr.msk.bf16.mxu0 %vm558_vm1, %v1251_v31  ;;  %1177 = vmatprep.mubr.msk.bf16.mxu1 %vm558_vm1, %v1252_v32 }
  0x49   : > { %1162 = vmatmul.mubr.msk.bf16.gmra.mrb[12].mxu0 %vm558_vm1, %v1253_v33  ;;  %1178 = vmatmul.mubr.msk.bf16.gmra.mrb[12].mxu1 %vm558_vm1, %v1254_v34 }
 0x104   : > { %v1151_v36 = vpop.f32.mrb[0].mxu0  ;;  %v1167_v37 = vpop.f32.mrb[0].mxu1 }
 0x105   : > { %v645_v38 = vpop.f32.mrb[1].mxu0  ;;  %v709_v40 = vpop.f32.mrb[1].mxu1  ;;  %v654_v45 = vadd.f32 %v1151_v36, %v1464_v35  ;;  %v718_v48 = vadd.f32 %v1167_v37, %v1464_v35 }
 0x106   : > { %v646_v39 = vadd.f32 %v1464_v35, %v645_v38  ;;  %v1152_v41 = vpop.f32.mrb[2].mxu0  ;;  %v710_v42 = vadd.f32 %v1464_v35, %v709_v40  ;;  %v1168_v43 = vpop.f32.mrb[2].mxu1 }
 0x107   : > { %v648_v44 = vpop.f32.mrb[3].mxu0  ;;  %v712_v47 = vpop.f32.mrb[3].mxu1  ;;  %v657_v51 = vadd.f32 %v1152_v41, %v1464_v35  ;;  %v721_v54 = vadd.f32 %v1168_v43, %v1464_v35  ;;  %v774_v56 = vmax.f32 %v654_v45, 0.0  ;;  %v790_v59 = vmax.f32 %v718_v48, 0.0 }
 0x108   : > { %v649_v46 = vadd.f32 %v1464_v35, %v648_v44  ;;  %v713_v49 = vadd.f32 %v1464_v35, %v712_v47  ;;  %v772_v50 = vmax.f32 %v646_v39, 0.0  ;;  %v788_v53 = vmax.f32 %v710_v42, 0.0 }
 0x109   : > { %v775_v63 = vmax.f32 %v657_v51, 0.0  ;;  %v791_v4 = vmax.f32 %v721_v54, 0.0 }
 0x10a   : > { %v773_v52 = vmax.f32 %v649_v46, 0.0  ;;  %v789_v55 = vmax.f32 %v713_v49, 0.0 }
 0x10c   : > { %v805_v57 = vadd.f32 %v773_v52, %v772_v50  ;;  %v1155_v58 = vpop.f32.mrb[4].mxu0  ;;  %v826_v60 = vadd.f32 %v789_v55, %v788_v53  ;;  %v1171_v61 = vpop.f32.mrb[4].mxu1 }
 0x10d   : > { %v661_v62 = vpop.f32.mrb[5].mxu0  ;;  %v725_v2 = vpop.f32.mrb[5].mxu1  ;;  %v670_v12 = vadd.f32 %v1155_v58, %v1464_v35  ;;  %v734_v16 = vadd.f32 %v1171_v61, %v1464_v35 }
 0x10e   : > { %v806_v0 = vadd.f32 %v805_v57, %v774_v56  ;;  %v662_v1 = vadd.f32 %v1464_v35, %v661_v62  ;;  %v1156_v3 = vpop.f32.mrb[6].mxu0  ;;  %v827_v5 = vadd.f32 %v826_v60, %v790_v59  ;;  %v726_v6 = vadd.f32 %v1464_v35, %v725_v2  ;;  %v1172_v7 = vpop.f32.mrb[6].mxu1 }
 0x10f   : > { %v664_v8 = vpop.f32.mrb[7].mxu0  ;;  %v728_v11 = vpop.f32.mrb[7].mxu1  ;;  %v673_v20 = vadd.f32 %v1156_v3, %v1464_v35  ;;  %v737_v22 = vadd.f32 %v1172_v7, %v1464_v35  ;;  %v778_v25 = vmax.f32 %v670_v12, 0.0  ;;  %v794_v29 = vmax.f32 %v734_v16, 0.0 }
 0x110   : > { %v776_v9 = vmax.f32 %v662_v1, 0.0  ;;  %v807_v10 = vadd.f32 %v806_v0, %v775_v63  ;;  %v792_v13 = vmax.f32 %v726_v6, 0.0  ;;  %v828_v14 = vadd.f32 %v827_v5, %v791_v4 }
 0x111   : > { %v665_v15 = vadd.f32 %v1464_v35, %v664_v8  ;;  %v729_v18 = vadd.f32 %v1464_v35, %v728_v11  ;;  %v779_v34 = vmax.f32 %v673_v20, 0.0  ;;  %v795_v40 = vmax.f32 %v737_v22, 0.0 }
 0x112   : > { %v808_v17 = vadd.f32 %v807_v10, %v776_v9  ;;  %v829_v19 = vadd.f32 %v828_v14, %v792_v13 }
 0x113   : > { %v777_v21 = vmax.f32 %v665_v15, 0.0  ;;  %v793_v23 = vmax.f32 %v729_v18, 0.0 }
 0x114   : > { %v1159_v24 = vpop.f32.mrb[8].mxu0  ;;  %v1175_v27 = vpop.f32.mrb[8].mxu1 }
 0x115   : > { %v809_v26 = vadd.f32 %v808_v17, %v777_v21  ;;  %v677_v28 = vpop.f32.mrb[9].mxu0  ;;  %v830_v30 = vadd.f32 %v829_v19, %v793_v23  ;;  %v741_v32 = vpop.f32.mrb[9].mxu1  ;;  %v686_v44 = vadd.f32 %v1159_v24, %v1464_v35  ;;  %v750_v48 = vadd.f32 %v1175_v27, %v1464_v35 }
 0x116   : > { %v678_v31 = vadd.f32 %v1464_v35, %v677_v28  ;;  %v1160_v33 = vpop.f32.mrb[10].mxu0  ;;  %v742_v37 = vadd.f32 %v1464_v35, %v741_v32  ;;  %v1176_v38 = vpop.f32.mrb[10].mxu1 }
 0x117   : > { %v810_v36 = vadd.f32 %v809_v26, %v778_v25  ;;  %v680_v39 = vpop.f32.mrb[11].mxu0  ;;  %v831_v41 = vadd.f32 %v830_v30, %v794_v29  ;;  %v744_v43 = vpop.f32.mrb[11].mxu1  ;;  %v689_v52 = vadd.f32 %v1160_v33, %v1464_v35  ;;  %v753_v55 = vadd.f32 %v1176_v38, %v1464_v35 }
 0x118   : > { %v780_v42 = vmax.f32 %v678_v31, 0.0  ;;  %v796_v46 = vmax.f32 %v742_v37, 0.0  ;;  %v681_v47 = vadd.f32 %v1464_v35, %v680_v39  ;;  %v745_v50 = vadd.f32 %v1464_v35, %v744_v43 }
 0x119   : > { %v811_v45 = vadd.f32 %v810_v36, %v779_v34  ;;  %v832_v49 = vadd.f32 %v831_v41, %v795_v40  ;;  %v782_v58 = vmax.f32 %v686_v44, 0.0  ;;  %v798_v62 = vmax.f32 %v750_v48, 0.0 }
 0x11a   : > { %v781_v53 = vmax.f32 %v681_v47, 0.0  ;;  %v797_v56 = vmax.f32 %v745_v50, 0.0  ;;  %v783_v3 = vmax.f32 %v689_v52, 0.0  ;;  %v799_v8 = vmax.f32 %v753_v55, 0.0  ;;  %v1255_v50 = vld [vmem:[%s1570_s3] sm:$0xff] (!%p1104_p9)   ;;  %v1256_v52 = vld [vmem:[%s1570_s3 + $0x8] sm:$0xff] (!%p1104_p9)  }
 0x11b   : > { %v812_v51 = vadd.f32 %v811_v45, %v780_v42  ;;  %v833_v54 = vadd.f32 %v832_v49, %v796_v46  ;;  %v804_v46 = vld [vmem:[#allocation2] sm:$0x3] }
 0x11c   : > { %v1163_v57 = vpop.f32.mrb[12].mxu0  ;;  %v1179_v60 = vpop.f32.mrb[12].mxu1  ;;  %v1259_v55 = vld [vmem:[%s1570_s3 + $0x20] sm:$0xff] (!%p1104_p9)  }
 0x11d   : > { %v813_v59 = vadd.f32 %v812_v51, %v781_v53  ;;  %v693_v61 = vpop.f32.mrb[13].mxu0  ;;  %v834_v63 = vadd.f32 %v833_v54, %v797_v56  ;;  %v757_v1 = vpop.f32.mrb[13].mxu1  ;;  %v702_v12 = vadd.f32 %v1163_v57, %v1464_v35  ;;  %v766_v16 = vadd.f32 %v1179_v60, %v1464_v35  ;;  %v1257_v53 = vld [vmem:[%s1570_s3 + $0x10] sm:$0xff] (!%p1104_p9)   ;;  %v1258_v54 = vld [vmem:[%s1570_s3 + $0x18] sm:$0xff] (!%p1104_p9)   ;;  %v1260_v56 = vld [vmem:[%s1570_s3 + $0x28] sm:$0xff] (!%p1104_p9)  }
 0x11e   : > { %v694_v0 = vadd.f32 %v1464_v35, %v693_v61  ;;  %v1164_v2 = vpop.f32.mrb[14].mxu0  ;;  %v758_v5 = vadd.f32 %v1464_v35, %v757_v1  ;;  %v1180_v6 = vpop.f32.mrb[14].mxu1  ;;  %v1320_v51 = vmov (!%p1104_p9), 0.0   ;;  %v1261_v57 = vld [vmem:[%s1570_s3 + $0x30] sm:$0xff] (!%p1104_p9)   ;;  %v1262_v60 = vld [vmem:[%s1570_s3 + $0x38] sm:$0xff] (!%p1104_p9)  }
 0x11f   : > { %v814_v4 = vadd.f32 %v813_v59, %v782_v58  ;;  %v696_v7 = vpop.f32.mrb[15].mxu0  ;;  %v835_v9 = vadd.f32 %v834_v63, %v798_v62  ;;  %v760_v11 = vpop.f32.mrb[15].mxu1  ;;  %v705_v20 = vadd.f32 %v1164_v2, %v1464_v35  ;;  %v769_v23 = vadd.f32 %v1180_v6, %v1464_v35  ;;  %1181 = vmatprep.subr.bf16.mxu0 (!%p1104_p9), %v1320_v51  ;;  %v1105_v62 = vld [vmem:[%s1571_s4] ss:$0 sm:$0xff] (!%p1104_p9) }
 0x120   : > { %v784_v10 = vmax.f32 %v694_v0, 0.0  ;;  %v800_v14 = vmax.f32 %v758_v5, 0.0  ;;  %v697_v15 = vadd.f32 %v1464_v35, %v696_v7  ;;  %v761_v18 = vadd.f32 %v1464_v35, %v760_v11  ;;  %1182 = vmatpush3.bf16.msra.mxu0 (!%p1104_p9), %v1255_v50  ;;  %1197 = vmatprep.mubr.msk.bf16.mxu0 (!%p1104_p9), %vm1321_vm3, %v1320_v51 }
 0x121   : > { %v815_v13 = vadd.f32 %v814_v4, %v783_v3  ;;  %v836_v17 = vadd.f32 %v835_v9, %v799_v8  ;;  %v786_v25 = vmax.f32 %v702_v12, 0.0  ;;  %v802_v27 = vmax.f32 %v766_v16, 0.0  ;;  %1183 = vmatprep.subr.bf16.mxu0 (!%p1104_p9), %v1320_v51 }
 0x122   : > { %v785_v21 = vmax.f32 %v697_v15, 0.0  ;;  %v801_v24 = vmax.f32 %v761_v18, 0.0  ;;  %v787_v29 = vmax.f32 %v705_v20, 0.0  ;;  %v803_v31 = vmax.f32 %v769_v23, 0.0 }
 0x123   : > { %v816_v19 = vadd.f32 %v815_v13, %v784_v10  ;;  %v837_v22 = vadd.f32 %v836_v17, %v800_v14 }
 0x124   : > { %1184 = vmatpush3.bf16.msra.mxu0 (!%p1104_p9), %v1256_v52 }
 0x125   : > { %v817_v26 = vadd.f32 %v816_v19, %v785_v21  ;;  %v838_v28 = vadd.f32 %v837_v22, %v801_v24  ;;  %1185 = vmatprep.subr.bf16.mxu0 (!%p1104_p9), %v1320_v51  ;;  %v1114_v24 = vld [vmem:[%s1572_s5] ss:$0 sm:$0xff] (!%p1104_p9) }
 0x127   : > { %v818_v30 = vadd.f32 %v817_v26, %v786_v25  ;;  %v839_v32 = vadd.f32 %v838_v28, %v802_v27  ;;  %v1115_v26 = vld [vmem:[%s1573_s6] ss:$0 sm:$0xff] (!%p1104_p9) }
 0x128   : > { %1186 = vmatpush3.bf16.msra.mxu0 (!%p1104_p9), %v1257_v53 }
 0x129   : > { %v819_v33 = vadd.f32 %v818_v30, %v787_v29  ;;  %v840_v34 = vadd.f32 %v839_v32, %v803_v31  ;;  %1187 = vmatprep.subr.bf16.mxu0 (!%p1104_p9), %v1320_v51 }
 0x12b   : > { %v820_v36 = vrot.slane %v819_v33, 4  ;;  %v841_v37 = vrot.slane %v840_v34, 4 }
 0x12c   : > { %1188 = vmatpush3.bf16.msra.mxu0 (!%p1104_p9), %v1258_v54 }
 0x12d   : > { %v821_v38 = vadd.f32 %v820_v36, %v819_v33  ;;  %v842_v39 = vadd.f32 %v841_v37, %v840_v34  ;;  %1189 = vmatprep.subr.bf16.mxu0 (!%p1104_p9), %v1320_v51 }
 0x12f   : > { %v822_v40 = vrot.slane %v821_v38, 2  ;;  %v843_v41 = vrot.slane %v842_v39, 2 }
 0x130   : > { %1190 = vmatpush3.bf16.msra.mxu0 (!%p1104_p9), %v1259_v55 }
 0x131   : > { %v823_v42 = vadd.f32 %v822_v40, %v821_v38  ;;  %v844_v43 = vadd.f32 %v843_v41, %v842_v39  ;;  %1191 = vmatprep.subr.bf16.mxu0 (!%p1104_p9), %v1320_v51 }
 0x133   : > { %v824_v35 = vrot.slane %v823_v42, 1  ;;  %v845_v44 = vrot.slane %v844_v43, 1 }
 0x134   : > { %857 = sbr.rel (%p1104_p9) target bundleno = 594 (0x252), region = 97  ;;  %1192 = vmatpush3.bf16.msra.mxu0 (!%p1104_p9), %v1260_v56 }
 0x135   : > { %v825_v45 = vadd.f32 %v824_v35, %v823_v42  ;;  %v846_v47 = vadd.f32 %v845_v44, %v844_v43  ;;  %1193 = vmatprep.subr.bf16.mxu0 (!%p1104_p9), %v1320_v51 }
 0x137   : > { %v850_v48 = vsel %vm849_vm2, %v846_v47, %v825_v45 }
 0x138   : > { %v852_v49 = vadd.f32 %v850_v48, %v804_v46  ;;  %1194 = vmatpush3.bf16.msra.mxu0 (!%p1104_p9), %v1261_v57 }
 0x139   : > { %1195 = vmatprep.subr.bf16.mxu0 (!%p1104_p9), %v1320_v51 }
 0x13a   : > { %853 = vst [vmem:[#allocation2] sm:$0x3] %v852_v49 }
 0x13c   : > { %1196 = vmatpush3.bf16.msra.mxu0 %v1262_v60 }
 0x141   : > { %v858_v58 = vld [vmem:[#allocation2] sm:$0x3] }
 0x142   : > { %v859_v59 = vmul.f32 0.00390625, %v858_v58 }
 0x144   : > { %v860_v61 = vpack.c.bf16 %v859_v59, %v859_v59 }
 0x146   : > { %1198 = vmatmul.mubr.bf16.vlgmr.msra.gmra.mrb[0].mxu0 %v860_v61 }
 0x219   : > { %v966_v63 = vpop.f32.mrb[0].mxu0 }
 0x21a   : > { %v967_v0 = vadd.f32 %v1105_v62, %v966_v63  ;;  %v1199_v1 = vpop.f32.mrb[1].mxu0 }
 0x21b   : > { %v969_v2 = vpop.f32.mrb[2].mxu0 }
 0x21c   : > { %v972_v3 = vsel %vm607_vm0, %v967_v0, 0.0  ;;  %v1200_v4 = vpop.f32.mrb[3].mxu0 }
 0x21d   : > { %v973_v5 = vrot.slane %v972_v3, 4 }
 0x21f   : > { %v974_v6 = vadd.f32 %v973_v5, %v972_v3 }
 0x221   : > { %v975_v7 = vrot.slane %v974_v6, 2 }
 0x223   : > { %v976_v8 = vadd.f32 %v975_v7, %v974_v6 }
 0x225   : > { %v977_v9 = vrot.slane %v976_v8, 1 }
 0x227   : > { %v978_v10 = vadd.f32 %v977_v9, %v976_v8 }
 0x229   : > { %v979_v11 = vmul.f32 0.5, %v978_v10 }
 0x22b   : > { %v980_v12 = vsub.f32 %v967_v0, %v979_v11 }
 0x22d   : > { %v981_v13 = vmul.f32 %v980_v12, %v980_v12 }
 0x22f   : > { %v982_v14 = vsel %vm607_vm0, %v981_v13, 0.0 }
 0x230   : > { %v983_v15 = vrot.slane %v982_v14, 4 }
 0x232   : > { %v984_v16 = vadd.f32 %v983_v15, %v982_v14 }
 0x234   : > { %v985_v17 = vrot.slane %v984_v16, 2 }
 0x236   : > { %v986_v18 = vadd.f32 %v985_v17, %v984_v16 }
 0x238   : > { %v987_v19 = vrot.slane %v986_v18, 1 }
 0x23a   : > { %v988_v20 = vadd.f32 %v987_v19, %v986_v18 }
 0x23c   : > { %v989_v21 = vmul.f32 0.5, %v988_v20 }
 0x23e   : > { %v990_v22 = vadd.f32 1e-05, %v989_v21 }
 0x240   : > { %1263 = vrsqrt.f32 %v990_v22 }
 0x24a   : > { %v1264_v23 = vpop.eup %1263 }
 0x24b   : > { %v992_v25 = vmul.f32 %v1264_v23, %v980_v12 }
 0x24d   : > { %v1000_v27 = vmul.f32 %v1114_v24, %v992_v25 }
 0x24f   : > { %v1008_v28 = vadd.f32 %v1115_v26, %v1000_v27 }
 0x251   : > { %1009 = vst [vmem:[#allocation4] sm:$0x3] %v1008_v28 }
 0x252 PF: > { %p1209_p10 = scmp.eq.s32.totalorder %s1379_s27, 1  ;;  %s1322_s29 = smov [#allocation4]  }
 0x253   : > { %s1017_s30 = sshll.u32 %s1322_s29, 4  ;;  %s1018_s30 = int_to_ptr.vmem [resolvable:$true] %s1017_s30 }
 0x254   : > { %s1265_s9 = scalar_lea.vmem %s1018_s30, 32  ;;  %p1272_p0 = scmp.lt.s32.totalorder %s1018_s30, %s1018_s30 }
 0x255   : > { %p1266_p11 = scmp.ne.s32.totalorder %s1018_s30, %s1265_s9  ;;  %p1273_p1 = scmp.lt.s32.totalorder %s1265_s9, %s1265_s9 }
 0x257   : > { %p1267_p12 = pnand %p1266_p11, %p1209_p10  ;;  %p1274_p2 = por %p1273_p1, %p1272_p0 }
 0x259   : > { %p1268_p13 = pneg %p1267_p12 }
 0x25b   : > { %p1275_p3 = pnand %p1274_p2, %p1268_p13 }
 0x25d   : > { %1278 = shalt.err (!%p1275_p3)
}
 0x25e   : > { %s1279_s12 = scalar_lea.hbm %s1574_s7, 32 }
 0x25f   : > { %p1280_p4 = scmp.ne.s32.totalorder %s1574_s7, %s1279_s12  ;;  %p1285_p7 = scmp.lt.u32.totalorder %s1279_s12, %s1574_s7 }
 0x261   : > { %p1281_p5 = pnand %p1280_p4, %p1209_p10 }
 0x263   : > { %p1282_p6 = pneg %p1281_p5 }
 0x265   : > { %p1287_p8 = pnand %p1285_p7, %p1282_p6 }
 0x267   : > { %1290 = shalt.err (!%p1287_p8)
}
 0x268   : > { %1206 = dma.vmem_to_hbm [thread:$0]  (%p1209_p10), %s1018_s30, 32, %s1574_s7, [#allocation5]  }
 0x269   : > { %1304 = dma.done.wait (%p1209_p10), [#allocation5], 32  }
 0x26a   : > { %1306 = vsyncadd (%p1209_p10), [#allocation5], 4294967264 }
 0x26b PF: > { %p15_p9 = scmp.ge.s32.totalorder %s1382_s28, 4   ;;  %s1575_s24 = smov %s1313_s25 }
 0x26c   : > { %s1576_s25 = smov %s1391_s8  ;;  %s1577_s26 = smov %s1382_s28 }
 0x26d   :  { %17 = sbr.rel (!%p15_p9) target bundleno = 2 (0x2), region = 129 }
 0x274   :  { %1030 = vsyncpa [#allocation5], 1 }
 0x275   :  { %1032 = vsyncpa [#allocation5 + $0x1], 1 }

</bundles_post_ra>
